<compile_context>
chip_gen: v6e
topology: v6e:2x2x1
jax: 0.10.0
libtpu: 0.0.40
codegen_flags: <defaults>
</compile_context>

<pallas_src>
import jax
import jax.numpy as jnp
from jax import lax
from jax.experimental import pallas as pl
from jax.experimental.pallas import tpu as pltpu


def gcn_kernel(adj_ref, xw1_ref, poolt_ref, w2_ref, bias_ref, fw1_ref, fw2_ref,
               out_ref, g_acc):
    f32 = jnp.float32
    bf16 = jnp.bfloat16
    i = pl.program_id(0)

    hidden = w2_ref.shape[1]
    fc1_out = fw1_ref.shape[1]
    n_out = fw2_ref.shape[1]

    @pl.when(i == 0)
    def _init():
        g_acc[...] = jnp.zeros_like(g_acc)

    biases = bias_ref[...]                                    # [4, bw] f32 packed slab
    b1 = biases[0:1, :hidden]

    adj = adj_ref[...]                                        # [tm, Np] bf16 row tile

    # --- GCNConv 1:  h = A_hat[rows, :] @ (x @ W1) + b1   (xW1 precomputed) ---
    h = jnp.dot(adj, xw1_ref[...], preferred_element_type=f32) + b1          # [tm, H]

    # --- ELU (alpha = 1.0); clamp before exp so positive lanes never produce inf ---
    h = jnp.where(h > 0, h, jnp.exp(jnp.minimum(h, 0.0)) - 1.0)

    # (dropout p=0.6 is identity in eval mode)

    # --- GCNConv 2 projection ---
    hw = jnp.dot(h.astype(bf16), w2_ref[...], preferred_element_type=f32)    # [tm, H]

    # --- fused conv2 aggregation + global_mean_pool --------------------------------
    # pool @ (A_hat @ hw + b2) == (pool @ A_hat) @ hw + b2 (pool rows sum to 1), and
    # since A_hat is symmetric the needed PA column tile comes from the resident row
    # tile:  PA[:, rows]^T = A_hat[rows, :] @ pool^T.
    pa_t = jnp.dot(adj, poolt_ref[...], preferred_element_type=f32)          # [tm, G]
    g_acc[...] += lax.dot_general(                                           # [G, H]
        pa_t.astype(bf16), hw.astype(bf16),
        dimension_numbers=(((0,), (0,)), ((), ())),          # contract over row tile
        preferred_element_type=f32)

    @pl.when(i == pl.num_programs(0) - 1)
    def _finalize():
        g = g_acc[...] + biases[1:2, :hidden]                 # + b2 (pool rows sum to 1)

        # --- head (microscopic; kept f32) ---
        t = jnp.dot(g, fw1_ref[...], preferred_element_type=f32) + biases[2:3, :fc1_out]
        t = jnp.maximum(t, 0.0)                               # ReLU
        logits = jnp.dot(t, fw2_ref[...], preferred_element_type=f32) + biases[3:4, :n_out]

        # --- log_softmax over dim=1 (numerically stable) ---
        m = jnp.max(logits, axis=1, keepdims=True)
        z = logits - m
        out_ref[...] = z - jnp.log(jnp.sum(jnp.exp(z), axis=1, keepdims=True))


def _vmem_capacity_bytes():
    """Physical VMEM per TensorCore; conservative fallback = v7x's 64 MiB."""
    try:
        return int(pltpu.get_tpu_info().vmem_capacity_bytes)
    except Exception:
        return 64 * 1024 * 1024


def _choose_tiling(num_nodes, vmem_limit_bytes):
    """Pick (tm, n_pad): streamed row-tile size and zero-padded node count.

    Small graphs: single whole-array block (no (8,128) constraint when block == array).
    Large graphs: pad N to a multiple of 256, then take the largest of 1024/512/256 row
    tiles whose double-buffered bf16 adj stream stays under ~60% of the VMEM budget."""
    if num_nodes <= 512:
        return num_nodes, num_nodes
    n_pad = -(-num_nodes // 256) * 256
    budget = int(vmem_limit_bytes * 0.6)
    for tm in (1024, 512, 256):
        if n_pad % tm == 0 and 2 * tm * n_pad * 2 <= budget:
            return tm, n_pad
    return 256, n_pad


def gcn_forward(adj_hat, x, w1, b1, w2, b2, pool, fw1, fb1, fw2, fb2, tiling=None):
    """Fused GCN forward (eval mode). Assumes A_hat symmetric (undirected gcn_norm)."""
    f32 = jnp.float32
    bf16 = jnp.bfloat16

    num_nodes, _ = x.shape
    hidden = w1.shape[1]
    num_graphs = pool.shape[0]
    fc1_out = fw1.shape[1]
    out_ch = fw2.shape[1]

    # Generation-aware VMEM budget: ~48 MiB on v7x (64 MiB/TC), up to 96 MiB on v5e/v6e.
    vmem_limit = max(min(int(_vmem_capacity_bytes() * 0.75), 96 * 1024 * 1024),
                     32 * 1024 * 1024)

    if tiling is None:
        tm, n_pad = _choose_tiling(num_nodes, vmem_limit)
    else:
        tm, n_pad = tiling
        assert n_pad >= num_nodes and n_pad % tm == 0

    # Tiny precompute: xW1 = x @ W1 ([N, H]); stays resident in VMEM.
    xw1 = jnp.dot(x.astype(f32), w1.astype(f32))

    # bf16 operands for the big MXU matmuls (accumulation stays f32 in-kernel).
    adj_bf = adj_hat.astype(bf16)
    xw1_bf = xw1.astype(bf16)
    poolt_bf = pool.T.astype(bf16)                            # [N, G]
    w2_bf = w2.astype(bf16)

    if n_pad != num_nodes:
        pad = n_pad - num_nodes
        # Zero-padded A_hat rows/cols and pool^T rows are neutral: padded adj rows give
        # zero PA weights, so their (b1-biased) h rows never reach the pooled accumulator.
        adj_bf = jnp.pad(adj_bf, ((0, pad), (0, pad)))
        xw1_bf = jnp.pad(xw1_bf, ((0, pad), (0, 0)))
        poolt_bf = jnp.pad(poolt_bf, ((0, pad), (0, 0)))

    # Pack the four tiny bias vectors into one [4, bw] slab (one DMA instead of four).
    bw = max(hidden, fc1_out, out_ch)
    bias_pack = jnp.zeros((4, bw), f32)
    bias_pack = bias_pack.at[0, :hidden].set(b1.reshape(-1).astype(f32))
    bias_pack = bias_pack.at[1, :hidden].set(b2.reshape(-1).astype(f32))
    bias_pack = bias_pack.at[2, :fc1_out].set(fb1.reshape(-1).astype(f32))
    bias_pack = bias_pack.at[3, :out_ch].set(fb2.reshape(-1).astype(f32))

    grid = (n_pad // tm,)

    in_specs = [
        pl.BlockSpec((tm, n_pad), lambda i: (i, 0)),          # A_hat row tile (streamed)
        pl.BlockSpec((n_pad, hidden), lambda i: (0, 0)),      # xW1 (resident)
        pl.BlockSpec((n_pad, num_graphs), lambda i: (0, 0)),  # pool^T (resident)
        pl.BlockSpec((hidden, hidden), lambda i: (0, 0)),     # W2
        pl.BlockSpec((4, bw), lambda i: (0, 0)),              # packed biases
        pl.BlockSpec((hidden, fc1_out), lambda i: (0, 0)),    # fc1 weight
        pl.BlockSpec((fc1_out, out_ch), lambda i: (0, 0)),    # fc2 weight
    ]
    out_specs = pl.BlockSpec((num_graphs, out_ch), lambda i: (0, 0))

    return pl.pallas_call(
        gcn_kernel,
        out_shape=jax.ShapeDtypeStruct((num_graphs, out_ch), f32),
        grid_spec=pltpu.PrefetchScalarGridSpec(
            num_scalar_prefetch=0,
            grid=grid,
            in_specs=in_specs,
            out_specs=out_specs,
            scratch_shapes=[pltpu.VMEM((num_graphs, hidden), f32)],
        ),
        compiler_params=pltpu.CompilerParams(
            # Row axis is a reduction into the pooled accumulator -> arbitrary.
            dimension_semantics=("arbitrary",),
            vmem_limit_bytes=vmem_limit,
        ),
    )(adj_bf, xw1_bf, poolt_bf, w2_bf, bias_pack, fw1.astype(f32), fw2.astype(f32))


def build_normalized_adjacency(edge_index, num_nodes):
    """A_hat = D^-1/2 (A + I) D^-1/2, dense. Plain-JAX glue (not the hot path)."""
    src, dst = edge_index[0], edge_index[1]
    adj = jnp.zeros((num_nodes, num_nodes), jnp.float32)
    # message flows src -> dst  =>  row = dst, col = src
    adj = adj.at[dst, src].set(1.0)
    idx = jnp.arange(num_nodes)
    adj = adj.at[idx, idx].set(1.0)          # self loops (dedup-safe, matches gcn_norm)
    deg = jnp.sum(adj, axis=1)
    dinv = jnp.where(deg > 0, 1.0 / jnp.sqrt(deg), 0.0)
    return dinv[:, None] * adj * dinv[None, :]


def build_mean_pool_matrix(batch, num_graphs, num_nodes):
    """P[g, n] = 1/count_g if batch[n] == g else 0."""
    onehot = (batch[None, :] == jnp.arange(num_graphs)[:, None]).astype(jnp.float32)
    counts = jnp.maximum(jnp.sum(onehot, axis=1, keepdims=True), 1.0)
    return onehot / counts


def _reference_forward(adj_hat, x, w1, b1, w2, b2, pool, fw1, fb1, fw2, fb2):
    """Unfused f32 reference matching the PyTorch module (eval mode)."""
    h = adj_hat @ (x @ w1) + b1
    h = jnp.where(h > 0, h, jnp.exp(h) - 1.0)
    h = adj_hat @ (h @ w2) + b2
    g = pool @ h
    g = jnp.maximum(g @ fw1 + fb1, 0.0)
    logits = g @ fw2 + fb2
    return jax.nn.log_softmax(logits, axis=1)


if __name__ == "__main__":
    # Small, deterministic problem: 2 graphs of 8 nodes each (ring graphs).
    # NOTE: at these sizes the kernel is pure fixed overhead; for real workloads,
    # batch many graphs block-diagonally so N reaches a few thousand.
    num_nodes = 16
    input_channels = 8
    hidden_channels = 32
    output_channels = 4
    num_graphs = 2

    key = jax.random.PRNGKey(0)
    ks = jax.random.split(key, 8)

    # Node features [N, Fin]
    x = jax.random.normal(ks[0], (num_nodes, input_channels), jnp.float32)

    # edge_index [2, E]: undirected ring within each 8-node graph
    src_list, dst_list = [], []
    for g in range(num_graphs):
        base = g * 8
        for i in range(8):
            a, b = base + i, base + (i + 1) % 8
            src_list += [a, b]
            dst_list += [b, a]
    edge_index = jnp.array([src_list, dst_list], dtype=jnp.int32)    # [2, 32]

    # batch assignment [N]
    batch = jnp.array([0] * 8 + [1] * 8, dtype=jnp.int32)

    # Deterministic parameter init (glorot-ish scaling); biases zero.
    def glorot(k, shape):
        fan_in, fan_out = shape
        s = jnp.sqrt(6.0 / (fan_in + fan_out))
        return jax.random.uniform(k, shape, jnp.float32, -s, s)

    w1 = glorot(ks[1], (input_channels, hidden_channels))
    b1 = jnp.zeros((1, hidden_channels), jnp.float32)
    w2 = glorot(ks[2], (hidden_channels, hidden_channels))
    b2 = jnp.zeros((1, hidden_channels), jnp.float32)
    fw1 = glorot(ks[3], (hidden_channels, 20))
    fb1 = jnp.zeros((1, 20), jnp.float32)
    fw2 = glorot(ks[4], (20, output_channels))
    fb2 = jnp.zeros((1, output_channels), jnp.float32)

    adj_hat = build_normalized_adjacency(edge_index, num_nodes)      # [N, N] (symmetric)
    pool = build_mean_pool_matrix(batch, num_graphs, num_nodes)      # [G, N]

    ref = _reference_forward(adj_hat, x, w1, b1, w2, b2, pool, fw1, fb1, fw2, fb2)

    # 1) Default tiling (single block at this size).
    out = gcn_forward(adj_hat, x, w1, b1, w2, b2, pool, fw1, fb1, fw2, fb2)
    out = jax.block_until_ready(out)

    assert out.shape == (num_graphs, output_channels)
    # log_softmax rows must sum to ~1 in prob space
    assert jnp.allclose(jnp.sum(jnp.exp(out), axis=1), 1.0, atol=1e-5)
    # Cross-check against the unfused f32 reference (bf16 matmuls -> loose tolerance).
    assert jnp.allclose(out, ref, atol=1e-1, rtol=1e-1), (out, ref)

    # 2) Forced multi-tile + zero-padding path (tm=8, N padded 16 -> 24) to exercise
    #    the streamed reduction and padding logic used for large graphs.
    out_pad = gcn_forward(adj_hat, x, w1, b1, w2, b2, pool, fw1, fb1, fw2, fb2,
                          tiling=(8, 24))
    out_pad = jax.block_until_ready(out_pad)
    assert jnp.allclose(jnp.sum(jnp.exp(out_pad), axis=1), 1.0, atol=1e-5)
    assert jnp.allclose(out_pad, ref, atol=1e-1, rtol=1e-1), (out_pad, ref)

    print("KERNEL_OK")
</pallas_src>

<mosaic_0001>
module attributes {stable_mosaic.version = 11 : i64} {
  func.func @gcn_kernel(%arg0: i32, %arg1: memref<16x16xbf16, #tpu.memory_space<vmem>>, %arg2: memref<16x32xbf16, #tpu.memory_space<vmem>>, %arg3: memref<16x2xbf16, #tpu.memory_space<vmem>>, %arg4: memref<32x32xbf16, #tpu.memory_space<vmem>>, %arg5: memref<4x32xf32, #tpu.memory_space<vmem>>, %arg6: memref<32x20xf32, #tpu.memory_space<vmem>>, %arg7: memref<20x4xf32, #tpu.memory_space<vmem>>, %arg8: memref<2x4xf32, #tpu.memory_space<vmem>>, %arg9: memref<2x32xf32, #tpu.memory_space<vmem>>) attributes {dimension_semantics = [#tpu.dimension_semantics<arbitrary>], iteration_bounds = array<i64: 1>, scalar_prefetch = 0 : i64, scratch_operands = 1 : i64, tpu.core_type = #tpu.core_type<tc>, window_params = [{transform_indices = @transform_0, window_bounds = array<i64: 16, 16>}, {pipeline_mode = #tpu.pipeline_mode<synchronous>, transform_indices = @transform_1, window_bounds = array<i64: 16, 32>}, {pipeline_mode = #tpu.pipeline_mode<synchronous>, transform_indices = @transform_2, window_bounds = array<i64: 16, 2>}, {pipeline_mode = #tpu.pipeline_mode<synchronous>, transform_indices = @transform_3, window_bounds = array<i64: 32, 32>}, {pipeline_mode = #tpu.pipeline_mode<synchronous>, transform_indices = @transform_4, window_bounds = array<i64: 4, 32>}, {pipeline_mode = #tpu.pipeline_mode<synchronous>, transform_indices = @transform_5, window_bounds = array<i64: 32, 20>}, {pipeline_mode = #tpu.pipeline_mode<synchronous>, transform_indices = @transform_6, window_bounds = array<i64: 20, 4>}, {pipeline_mode = #tpu.pipeline_mode<synchronous>, transform_indices = @transform_7, window_bounds = array<i64: 2, 4>}]} {
    %c0_i32 = arith.constant 0 : i32
    %0 = arith.cmpi eq, %arg0, %c0_i32 : i32
    %1 = arith.extui %0 : i1 to i32
    %c0_i32_0 = arith.constant 0 : i32
    %2 = arith.cmpi ne, %1, %c0_i32_0 : i32
    scf.if %2 {
      %cst_22 = arith.constant 0.000000e+00 : f32
      %32 = vector.broadcast %cst_22 : f32 to vector<2x32xf32>
      %c0_23 = arith.constant 0 : index
      %c0_24 = arith.constant 0 : index
      %33 = vector.load %arg9[%c0_23, %c0_24] : memref<2x32xf32, #tpu.memory_space<vmem>>, vector<2x32xf32>
      tpu.vector_store %arg9[%c0_23, %c0_24], %32 {strides = array<i32>} : memref<2x32xf32, #tpu.memory_space<vmem>>, vector<2x32xf32>,
    } else {
    }
    %c0 = arith.constant 0 : index
    %c0_1 = arith.constant 0 : index
    %3 = vector.load %arg5[%c0, %c0_1] : memref<4x32xf32, #tpu.memory_space<vmem>>, vector<4x32xf32>
    %4 = vector.extract_strided_slice %3 {offsets = [0, 0], sizes = [1, 32], strides = [1, 1]} : vector<4x32xf32> to vector<1x32xf32>
    %c0_2 = arith.constant 0 : index
    %c0_3 = arith.constant 0 : index
    %5 = vector.load %arg1[%c0_2, %c0_3] : memref<16x16xbf16, #tpu.memory_space<vmem>>, vector<16x16xbf16>
    %c0_4 = arith.constant 0 : index
    %c0_5 = arith.constant 0 : index
    %6 = vector.load %arg2[%c0_4, %c0_5] : memref<16x32xbf16, #tpu.memory_space<vmem>>, vector<16x32xbf16>
    %cst = arith.constant dense<0.000000e+00> : vector<16x32xf32>
    %7 = tpu.matmul %5, %6, %cst {dimension_numbers = #tpu.dot_dimension_numbers<[1], [0], [0], [1], [0, 0, 1, 1], [], []>} : vector<16x16xbf16>, vector<16x32xbf16>, vector<16x32xf32> -> vector<16x32xf32>
    %8 = vector.broadcast %4 : vector<1x32xf32> to vector<16x32xf32>
    %9 = arith.addf %7, %8 : vector<16x32xf32>
    %cst_6 = arith.constant 0.000000e+00 : f32
    %10 = vector.broadcast %cst_6 : f32 to vector<16x32xf32>
    %11 = arith.cmpf ogt, %9, %10 : vector<16x32xf32>
    %cst_7 = arith.constant 0.000000e+00 : f32
    %12 = vector.broadcast %cst_7 : f32 to vector<16x32xf32>
    %13 = arith.minimumf %9, %12 : vector<16x32xf32>
    %14 = math.exp %13 : vector<16x32xf32>
    %cst_8 = arith.constant 1.000000e+00 : f32
    %15 = vector.broadcast %cst_8 : f32 to vector<16x32xf32>
    %16 = arith.subf %14, %15 : vector<16x32xf32>
    %17 = arith.select %11, %9, %16 : vector<16x32xi1>, vector<16x32xf32>
    %18 = arith.truncf %17 : vector<16x32xf32> to vector<16x32xbf16>
    %c0_9 = arith.constant 0 : index
    %c0_10 = arith.constant 0 : index
    %19 = vector.load %arg4[%c0_9, %c0_10] : memref<32x32xbf16, #tpu.memory_space<vmem>>, vector<32x32xbf16>
    %cst_11 = arith.constant dense<0.000000e+00> : vector<16x32xf32>
    %20 = tpu.matmul %18, %19, %cst_11 {dimension_numbers = #tpu.dot_dimension_numbers<[1], [0], [0], [1], [0, 0, 1, 1], [], []>} : vector<16x32xbf16>, vector<32x32xbf16>, vector<16x32xf32> -> vector<16x32xf32>
    %c0_12 = arith.constant 0 : index
    %c0_13 = arith.constant 0 : index
    %21 = vector.load %arg3[%c0_12, %c0_13] : memref<16x2xbf16, #tpu.memory_space<vmem>>, vector<16x2xbf16>
    %cst_14 = arith.constant dense<0.000000e+00> : vector<16x2xf32>
    %22 = tpu.matmul %5, %21, %cst_14 {dimension_numbers = #tpu.dot_dimension_numbers<[1], [0], [0], [1], [0, 0, 1, 1], [], []>} : vector<16x16xbf16>, vector<16x2xbf16>, vector<16x2xf32> -> vector<16x2xf32>
    %c0_15 = arith.constant 0 : index
    %c0_16 = arith.constant 0 : index
    %23 = vector.load %arg9[%c0_15, %c0_16] : memref<2x32xf32, #tpu.memory_space<vmem>>, vector<2x32xf32>
    %24 = arith.truncf %22 : vector<16x2xf32> to vector<16x2xbf16>
    %25 = arith.truncf %20 : vector<16x32xf32> to vector<16x32xbf16>
    %cst_17 = arith.constant dense<0.000000e+00> : vector<2x32xf32>
    %26 = tpu.matmul %24, %25, %cst_17 {dimension_numbers = #tpu.dot_dimension_numbers<[0], [0], [1], [1], [0, 1, 1, 1], [], []>} : vector<16x2xbf16>, vector<16x32xbf16>, vector<2x32xf32> -> vector<2x32xf32>
    %27 = arith.addf %23, %26 : vector<2x32xf32>
    %c0_18 = arith.constant 0 : index
    %c0_19 = arith.constant 0 : index
    %28 = vector.load %arg9[%c0_18, %c0_19] : memref<2x32xf32, #tpu.memory_space<vmem>>, vector<2x32xf32>
    tpu.vector_store %arg9[%c0_18, %c0_19], %27 {strides = array<i32>} : memref<2x32xf32, #tpu.memory_space<vmem>>, vector<2x32xf32>,
    %c0_i32_20 = arith.constant 0 : i32
    %29 = arith.cmpi eq, %arg0, %c0_i32_20 : i32
    %30 = arith.extui %29 : i1 to i32
    %c0_i32_21 = arith.constant 0 : i32
    %31 = arith.cmpi ne, %30, %c0_i32_21 : i32
    scf.if %31 {
      %c0_22 = arith.constant 0 : index
      %c0_23 = arith.constant 0 : index
      %32 = vector.load %arg9[%c0_22, %c0_23] : memref<2x32xf32, #tpu.memory_space<vmem>>, vector<2x32xf32>
      %33 = vector.extract_strided_slice %3 {offsets = [1, 0], sizes = [1, 32], strides = [1, 1]} : vector<4x32xf32> to vector<1x32xf32>
      %34 = vector.broadcast %33 : vector<1x32xf32> to vector<2x32xf32>
      %35 = arith.addf %32, %34 : vector<2x32xf32>
      %c0_24 = arith.constant 0 : index
      %c0_25 = arith.constant 0 : index
      %36 = vector.load %arg6[%c0_24, %c0_25] : memref<32x20xf32, #tpu.memory_space<vmem>>, vector<32x20xf32>
      %cst_26 = arith.constant dense<0.000000e+00> : vector<2x20xf32>
      %37 = tpu.matmul %35, %36, %cst_26 {dimension_numbers = #tpu.dot_dimension_numbers<[1], [0], [0], [1], [0, 0, 1, 1], [], []>} : vector<2x32xf32>, vector<32x20xf32>, vector<2x20xf32> -> vector<2x20xf32>
      %38 = vector.extract_strided_slice %3 {offsets = [2, 0], sizes = [1, 20], strides = [1, 1]} : vector<4x32xf32> to vector<1x20xf32>
      %39 = vector.broadcast %38 : vector<1x20xf32> to vector<2x20xf32>
      %40 = arith.addf %37, %39 : vector<2x20xf32>
      %cst_27 = arith.constant 0.000000e+00 : f32
      %41 = vector.broadcast %cst_27 : f32 to vector<2x20xf32>
      %42 = arith.maximumf %40, %41 : vector<2x20xf32>
      %c0_28 = arith.constant 0 : index
      %c0_29 = arith.constant 0 : index
      %43 = vector.load %arg7[%c0_28, %c0_29] : memref<20x4xf32, #tpu.memory_space<vmem>>, vector<20x4xf32>
      %cst_30 = arith.constant dense<0.000000e+00> : vector<2x4xf32>
      %44 = tpu.matmul %42, %43, %cst_30 {dimension_numbers = #tpu.dot_dimension_numbers<[1], [0], [0], [1], [0, 0, 1, 1], [], []>} : vector<2x20xf32>, vector<20x4xf32>, vector<2x4xf32> -> vector<2x4xf32>
      %45 = vector.extract_strided_slice %3 {offsets = [3, 0], sizes = [1, 4], strides = [1, 1]} : vector<4x32xf32> to vector<1x4xf32>
      %46 = vector.broadcast %45 : vector<1x4xf32> to vector<2x4xf32>
      %47 = arith.addf %44, %46 : vector<2x4xf32>
      %cst_31 = arith.constant dense<0xFF800000> : vector<2xf32>
      %48 = vector.multi_reduction <maximumf>, %47, %cst_31 [1] : vector<2x4xf32> to vector<2xf32>
      %49 = vector.shape_cast %48 : vector<2xf32> to vector<2x1xf32>
      %50 = vector.broadcast %49 : vector<2x1xf32> to vector<2x4xf32>
      %51 = arith.subf %47, %50 : vector<2x4xf32>
      %52 = math.exp %51 : vector<2x4xf32>
      %cst_32 = arith.constant dense<0.000000e+00> : vector<2xf32>
      %53 = vector.multi_reduction <add>, %52, %cst_32 [1] : vector<2x4xf32> to vector<2xf32>
      %54 = vector.shape_cast %53 : vector<2xf32> to vector<2x1xf32>
      %55 = math.log %54 : vector<2x1xf32>
      %56 = vector.broadcast %55 : vector<2x1xf32> to vector<2x4xf32>
      %57 = arith.subf %51, %56 : vector<2x4xf32>
      %c0_33 = arith.constant 0 : index
      %c0_34 = arith.constant 0 : index
      %58 = vector.load %arg8[%c0_33, %c0_34] : memref<2x4xf32, #tpu.memory_space<vmem>>, vector<2x4xf32>
      tpu.vector_store %arg8[%c0_33, %c0_34], %57 {strides = array<i32>} : memref<2x4xf32, #tpu.memory_space<vmem>>, vector<2x4xf32>,
    } else {
    }
    return
  }
  func.func @transform_0(%arg0: i32) -> (i32, i32) {
    %c0_i32 = arith.constant 0 : i32
    %c0_i32_0 = arith.constant 0 : i32
    return %arg0, %c0_i32 : i32, i32
  }
  func.func @transform_1(%arg0: i32) -> (i32, i32) {
    %c0_i32 = arith.constant 0 : i32
    %c0_i32_0 = arith.constant 0 : i32
    %c0_i32_1 = arith.constant 0 : i32
    return %c0_i32, %c0_i32_0 : i32, i32
  }
  func.func @transform_2(%arg0: i32) -> (i32, i32) {
    %c0_i32 = arith.constant 0 : i32
    %c0_i32_0 = arith.constant 0 : i32
    %c0_i32_1 = arith.constant 0 : i32
    return %c0_i32, %c0_i32_0 : i32, i32
  }
  func.func @transform_3(%arg0: i32) -> (i32, i32) {
    %c0_i32 = arith.constant 0 : i32
    %c0_i32_0 = arith.constant 0 : i32
    %c0_i32_1 = arith.constant 0 : i32
    return %c0_i32, %c0_i32_0 : i32, i32
  }
  func.func @transform_4(%arg0: i32) -> (i32, i32) {
    %c0_i32 = arith.constant 0 : i32
    %c0_i32_0 = arith.constant 0 : i32
    %c0_i32_1 = arith.constant 0 : i32
    return %c0_i32, %c0_i32_0 : i32, i32
  }
  func.func @transform_5(%arg0: i32) -> (i32, i32) {
    %c0_i32 = arith.constant 0 : i32
    %c0_i32_0 = arith.constant 0 : i32
    %c0_i32_1 = arith.constant 0 : i32
    return %c0_i32, %c0_i32_0 : i32, i32
  }
  func.func @transform_6(%arg0: i32) -> (i32, i32) {
    %c0_i32 = arith.constant 0 : i32
    %c0_i32_0 = arith.constant 0 : i32
    %c0_i32_1 = arith.constant 0 : i32
    return %c0_i32, %c0_i32_0 : i32, i32
  }
  func.func @transform_7(%arg0: i32) -> (i32, i32) {
    %c0_i32 = arith.constant 0 : i32
    %c0_i32_0 = arith.constant 0 : i32
    %c0_i32_1 = arith.constant 0 : i32
    return %c0_i32, %c0_i32_0 : i32, i32
  }
}

</mosaic_0001>

<bundles_post_ra>
// kernel: tpu_custom_call.1
= control target key start
LH: loop header
LB: loop body
LE: loop exit
PB: predicated region body
PF: predicated region fallthrough
CT: control target
= control target key end

     0   :  { %v608_v1 = vmov 0.0   ;;  %vm609_vm0 = vmmov 0   ;;  %vm54_vm1 = vcmask 130048   ;;  %s740_s0 = inlined_call_operand.vmem [shape: bf16[16,16], index: 0, kind: input, shape index: {}]   ;;  %s741_s1 = inlined_call_operand.vmem [shape: bf16[16,32], index: 1, kind: input, shape index: {}]   ;;  %s742_s2 = inlined_call_operand.vmem [shape: bf16[16,2], index: 2, kind: input, shape index: {}]   ;;  %s743_s3 = inlined_call_operand.vmem [shape: bf16[32,32], index: 3, kind: input, shape index: {}]   ;;  %s744_s4 = inlined_call_operand.vmem [shape: f32[4,32], index: 4, kind: input, shape index: {}]   ;;  %s745_s5 = inlined_call_operand.vmem [shape: f32[32,20], index: 5, kind: input, shape index: {}]   ;;  %s746_s6 = inlined_call_operand.vmem [shape: f32[20,4], index: 6, kind: input, shape index: {}]   ;;  %s747_s7 = inlined_call_operand.hbm [shape: f32[2,4], index: 7, kind: output, shape index: {}]  }
   0x1   :  { %v573_v0 = vld [vmem:[%s741_s1] sm:$0xff]   ;;  %523 = vmatprep.subr.bf16.mxu0 %v608_v1  ;;  %529 = vmatprep.subr.bf16.mxu1 %v608_v1 }
   0x2   :  { %v574_v2 = vld [vmem:[%s740_s0] sm:$0xff]   ;;  %524 = vmatpush3.bf16.msra.mxu0 %v573_v0  ;;  %525 = vmatprep.mubr.msk.bf16.mxu0 %vm609_vm0, %v608_v1 }
   0x3   :  { %v575_v3 = vld [vmem:[%s742_s2] sm:$0xff]   ;;  %537 = vmatprep.subr.bf16.mxu0 %v608_v1  ;;  %533 = vmatprep.mubr.msk.bf16.mxu1 %vm609_vm0, %v608_v1 }
   0x5   :  { %526 = vmatmul.mubr.msk.bf16.vlgmr.msra.gmra.mxu0 %vm54_vm1, %v574_v2 }
   0x6   :  { %12 = vsyncpa [#allocation4], 0  ;;  %538 = vmatpush3.bf16.msra.mxu0 %v575_v3  ;;  %539 = vmatprep.mubr.msk.bf16.mxu0 %vm609_vm0, %v608_v1  ;;  %v576_v4 = vld [vmem:[%s743_s3 + $0x8] sm:$0xff]   ;;  %v577_v5 = vld [vmem:[%s743_s3] sm:$0xff]   ;;  %v39_v6 = vlaneseq  ;;  %vm128_vm4 = vcmask 261120   ;;  %vm32_vm5 = vcmask 254976  }
   0x7   :  { %549 = vmatprep.subr.mxu0 %v608_v1  ;;  %530 = vmatpush3.bf16.msra.mxu1 %v576_v4  ;;  %v688_v9 = vld [vmem:[%s744_s4] sm:$0xf]  ;;  %33 = vst.msk [vmem:[#allocation2] sm:$0x3] %vm32_vm5, %v608_v1  ;;  %v299_v39 = vld [vmem:[%s745_s5 + $0x18] sm:$0xff]  ;;  %v298_v40 = vld [vmem:[%s745_s5 + $0x10] sm:$0xff] }
   0x8   :  { %531 = vmatprep.subr.bf16.mxu1 %v608_v1  ;;  %v682_v7 = vshrl.u32 %v39_v6, 7  ;;  %v297_v41 = vld [vmem:[%s745_s5 + $0x8] sm:$0xff]  ;;  %v296_v42 = vld [vmem:[%s745_s5] sm:$0xff]  ;;  %v380_v53 = vld [vmem:[%s746_s6 + $0x10] sm:$0xf]  ;;  %vm389_vm6 = vcmask 1043456  }
   0x9   :  { %v379_v54 = vld [vmem:[%s746_s6 + $0x8] sm:$0xff]  ;;  %v378_v55 = vld [vmem:[%s746_s6] sm:$0xff]  ;;  %vm385_vm7 = vcmask 162816   ;;  %vm463_vm8 = vcmask 25600   ;;  %s610_s6 = smov [#allocation3]  }
   0xa   :  { %v41_v8 = vsub.s32 0, %v682_v7  ;;  %v293_v47 = vsub.s32 1, %v682_v7  ;;  %v302_v56 = vsub.s32 2, %v682_v7  ;;  %v383_v62 = vsub.s32 3, %v682_v7  ;;  %s483_s21 = sshll.u32 %s610_s6, 4  ;;  %s484_s21 = int_to_ptr.vmem [resolvable:$true] %s483_s21 }
   0xb   :  { %532 = vmatpush3.bf16.msra.mxu1 %v577_v5  ;;  %s586_s22 = scalar_lea.vmem %s484_s21, 32  ;;  %p591_p1 = scmp.lt.s32.totalorder %s484_s21, %s484_s21 }
   0xc   :  { %543 = vmatprep.subr.bf16.mxu1 %v608_v1  ;;  %v42_v10 = vrot.slane %v688_v9, %v41_v8  ;;  %v294_v50 = vrot.slane %v688_v9, %v293_v47  ;;  %v303_v57 = vrot.slane %v688_v9, %v302_v56  ;;  %v384_v63 = vrot.slane %v688_v9, %v383_v62  ;;  %p587_p0 = scmp.ne.s32.totalorder %s484_s21, %s586_s22  ;;  %p592_p2 = scmp.lt.s32.totalorder %s586_s22, %s586_s22 }
   0xd   :  { %540 = vmatmul.mubr.msk.bf16.vlgmr.msra.gmra.mxu0 %vm54_vm1, %v574_v2 }
   0xe   :  { %557 = vmatprep.mubr.msk.f32.mxu0 %vm609_vm0, %v608_v1  ;;  %550 = vmatpush3.msra.mxu0 %v299_v39  ;;  %v222_v43 = vld [vmem:[#allocation2] sm:$0x3]  ;;  %p593_p3 = por %p592_p2, %p591_p1 }
   0xf   :  { %551 = vmatprep.subr.mxu0 %v608_v1 }
  0x10   :  { %552 = vmatpush3.msra.mxu0 %v298_v40  ;;  %p594_p4 = pnand %p593_p3, %p587_p0 }
  0x11   :  { %553 = vmatprep.subr.mxu0 %v608_v1 }
  0x12   :  { %554 = vmatpush3.msra.mxu0 %v297_v41 }
  0x13   :  { %555 = vmatprep.subr.mxu0 %v608_v1 }
  0x14   :  { %556 = vmatpush3.msra.mxu0 %v296_v42 }
  0xc5   :  { %v92_v11 = vpop.f32.mrf.mxu0 }
  0xc6   :  { %v93_v12 = vadd.f32 %v92_v11, %v42_v10 }
  0xc7   :  { %v527_v13 = vpop.f32.mrf.mxu0 }
  0xc8   :  { %v101_v14 = vmin.f32 %v93_v12, 0.0  ;;  %vm99_vm2 = vcmp.gt.f32.partialorder %v93_v12, 0.0 }
  0xc9   :  { %v95_v15 = vpop.f32.mrf.mxu0 }
  0xca   :  { %v103_v16 = vmul.f32 1.442695, %v101_v14  ;;  %v96_v17 = vadd.f32 %v95_v15, %v42_v10 }
  0xcb   :  { %v528_v18 = vpop.f32.mrf.mxu0 }
  0xcc   :  { %578 = vpow2.f32 %v103_v16  ;;  %v102_v19 = vmin.f32 %v96_v17, 0.0  ;;  %vm100_vm3 = vcmp.gt.f32.partialorder %v96_v17, 0.0 }
  0xcd   :  { %v215_v20 = vpop.f32.mrf.mxu0 }
  0xce   :  { %v105_v21 = vmul.f32 1.442695, %v102_v19 }
  0xcf   :  { %v541_v22 = vpop.f32.mrf.mxu0 }
  0xd0   :  { %580 = vpow2.f32 %v105_v21 }
  0xd1   :  { %v218_v23 = vpop.f32.mrf.mxu0 }
  0xd2   :  { %v223_v24 = vpack.c.bf16 %v218_v23, %v215_v20 }
  0xd3   :  { %v542_v25 = vpop.f32.mrf.mxu0 }
  0xd4   :  { %225 = vxpose.xlu0.c.b16.start.end [1/1] (short) (narrow) %v223_v24, 16 }
  0xd9   :  { %v579_v26 = vpop.eup %578 }
  0xda   :  { %v494_v27 = vadd.f32 -1.0, %v579_v26 }
  0xdc   :  { %v109_v30 = vsel %vm99_vm2, %v93_v12, %v494_v27 }
  0xdd   :  { %v581_v28 = vpop.eup %580 }
  0xde   :  { %v495_v29 = vadd.f32 -1.0, %v581_v28 }
  0xe0   :  { %v110_v31 = vsel %vm100_vm3, %v96_v17, %v495_v29 }
  0xe1   :  { %v111_v32 = vpack.c.bf16 %v110_v31, %v109_v30 }
  0xe3   :  { %534 = vmatmul.mubr.msk.bf16.vlgmr.msra.gmra.mxu1 %vm128_vm4, %v111_v32 }
  0xe4   :  { %545 = vmatprep.mubr.msk.bf16.mxu1 %vm609_vm0, %v608_v1 }
 0x136   :  { %v233_v38 = vpop.trf.xlu0 }
 0x1a3   :  { %v166_v33 = vpop.f32.mrf.mxu1 }
 0x1a5   :  { %v535_v34 = vpop.f32.mrf.mxu1 }
 0x1a7   :  { %v169_v35 = vpop.f32.mrf.mxu1 }
 0x1a8   :  { %v224_v36 = vpack.c.bf16 %v169_v35, %v166_v33 }
 0x1a9   :  { %v536_v37 = vpop.f32.mrf.mxu1 }
 0x1aa   :  { %544 = vmatpush3.bf16.msra.mxu1 %v224_v36 }
 0x1ab   :  { %560 = vmatprep.subr.mxu1 %v608_v1 }
 0x1ad   :  { %546 = vmatmul.mubr.msk.bf16.vlgmr.msra.gmra.mxu1 %vm54_vm1, %v233_v38 }
 0x1ae   :  { %566 = vmatprep.mubr.msk.f32.mxu1 %vm609_vm0, %v608_v1  ;;  %561 = vmatpush3.msk.msra.mxu1 %vm389_vm6, %v380_v53 }
 0x1af   :  { %562 = vmatprep.subr.mxu1 %v608_v1 }
 0x1b0   :  { %563 = vmatpush3.msra.mxu1 %v379_v54 }
 0x1b1   :  { %564 = vmatprep.subr.mxu1 %v608_v1 }
 0x1b2   :  { %565 = vmatpush3.msra.mxu1 %v378_v55 }
 0x26d   :  { %v278_v44 = vpop.f32.mrf.mxu1 }
 0x26e   :  { %v284_v45 = vadd.f32 %v278_v44, %v222_v43 }
 0x26f   :  { %v547_v46 = vpop.f32.mrf.mxu1 }
 0x270   :  { %286 = vst.msk [vmem:[#allocation2] sm:$0x3] %vm32_vm5, %v284_v45 }
 0x271   :  { %v281_v48 = vpop.f32.mrf.mxu1 }
 0x273   :  { %v548_v49 = vpop.f32.mrf.mxu1 }
 0x277   :  { %v290_v51 = vld [vmem:[#allocation2] sm:$0x3] }
 0x278   :  { %v295_v52 = vadd.f32 %v294_v50, %v290_v51 }
 0x27a   :  { %558 = vmatmul.mubr.msk.f32.vlgmr.msra.gmra.mxu0 %vm128_vm4, %v295_v52 }
 0x33a   :  { %v373_v58 = vpop.f32.mrf.mxu0 }
 0x33b   :  { %v374_v59 = vadd.f32 %v373_v58, %v303_v57 }
 0x33c   :  { %v559_v60 = vpop.f32.mrf.mxu0 }
 0x33d   :  { %v377_v61 = vmax.f32 %v374_v59, 0.0 }
 0x33f   :  { %567 = vmatmul.mubr.msk.f32.vlgmr.msra.gmra.mxu1 %vm385_vm7, %v377_v61 }
 0x3ff   :  { %v459_v0 = vpop.f32.mrf.mxu1 }
 0x400   :  { %v460_v1 = vadd.f32 %v459_v0, %v384_v63 }
 0x401   :  { %v568_v2 = vpop.f32.mrf.mxu1 }
 0x402   :  { %v464_v3 = vsel %vm463_vm8, %v460_v1, -inf }
 0x403   :  { %465 = vmax.xlane.f32.xlu0 %v464_v3 }
 0x48c   :  { %v466_v4 = vpop.xlane.xlu0 %465 }
 0x48d   :  { %v467_v5 = vsub.f32 %v460_v1, %v466_v4 }
 0x48f   :  { %v468_v6 = vmul.f32 1.442695, %v467_v5 }
 0x491   :  { %582 = vpow2.f32 %v468_v6 }
 0x49e   :  { %v583_v8 = vpop.eup %582 }
 0x49f   :  { %v470_v10 = vsel %vm463_vm8, %v583_v8, 0.0 }
 0x4a0   :  { %471 = vadd.xlane.f32.xlu1 %v470_v10 }
 0x529   :  { %v472_v11 = vpop.xlane.xlu1 %471 }
 0x52a   :  { %584 = vlog2.f32 %v472_v11 }
 0x537   :  { %v585_v7 = vpop.eup %584 }
 0x538   :  { %v474_v9 = vmul.f32 0.6931472, %v585_v7 }
 0x53a   :  { %v475_v12 = vsub.f32 %v467_v5, %v474_v9 }
 0x53c   :  { %476 = vst.msk [vmem:[#allocation3] sm:$0x3] %vm463_vm8, %v475_v12 }
 0x53d   :  { %597 = shalt.err (!%p594_p4)
}
 0x53e   :  { %486 = dma.vmem_to_hbm [thread:$0]  %s484_s21, 32, %s747_s7, [#allocation4]  }
 0x53f   :  { %606 = dma.done.wait [#allocation4], 32  }
 0x540   :  { %607 = vsyncadd [#allocation4], 4294967264 }
 0x541   :  { %490 = vsyncpa [#allocation4], 1 }

</bundles_post_ra>
